<compile_context>
chip_gen: v7x
topology: tpu7x:2x2x1
jax: 0.10.0
libtpu: 0.0.40
codegen_flags: <defaults>
</compile_context>

<pallas_src>
import functools

import jax
import jax.numpy as jnp
from jax.experimental import pallas as pl
from jax.experimental.pallas import tpu as pltpu

BN_EPS = 1e-5


def _round_up(v, m):
    return ((v + m - 1) // m) * m


# ----------------------------------------------------------------------------- pass 1
def _conv_stats_kernel(p_ref, w_ref, y_ref, stats_ref):
    # p_ref:     (tm, KDp)  bf16 im2col patch tile
    # w_ref:     (KDp, tn)  bf16 weight tile
    # y_ref:     (tm, tn)   f32 raw conv output tile
    # stats_ref: (8, tn)    f32: row 0 = sum(y), row 1 = sum(y*y), rows 2..7 = 0
    y = jnp.dot(p_ref[...], w_ref[...], preferred_element_type=jnp.float32)  # MXU
    y_ref[...] = y.astype(y_ref.dtype)

    ssum = jnp.sum(y, axis=0, keepdims=True)        # (1, tn)
    ssq = jnp.sum(y * y, axis=0, keepdims=True)     # (1, tn)
    row = jax.lax.broadcasted_iota(jnp.int32, stats_ref.shape, 0)
    stats_ref[...] = jnp.where(row == 0, ssum, jnp.where(row == 1, ssq, 0.0))


# ----------------------------------------------------------------------------- pass 2
def _bn_silu_kernel(y_ref, scale_ref, shift_ref, o_ref):
    # y_ref: (tm, tn) f32;  scale/shift: (1, tn) f32 folded BN affine;  o_ref: (tm, tn)
    z = y_ref[...] * scale_ref[...] + shift_ref[...]
    o_ref[...] = (z * jax.nn.sigmoid(z)).astype(o_ref.dtype)   # SiLU (sigmoid -> EUP)


def _im2col(x_nchw, k, stride, padding):
    n, c_in, h, w = x_nchw.shape
    x_nhwc = jnp.transpose(x_nchw, (0, 2, 3, 1))
    x_pad = jnp.pad(x_nhwc, ((0, 0), (padding, padding), (padding, padding), (0, 0)))
    h_out = (h + 2 * padding - k) // stride + 1
    w_out = (w + 2 * padding - k) // stride + 1
    cols = []
    for di in range(k):
        for dj in range(k):
            cols.append(
                x_pad[:, di:di + h_out * stride:stride, dj:dj + w_out * stride:stride, :]
            )
    # patch feature order: (ki, kj, c_in) -- Cin last so KD padding is cheap
    patches = jnp.concatenate(cols, axis=-1)                      # (N, Ho, Wo, K*K*Cin)
    patches = patches.reshape(n * h_out * w_out, k * k * c_in)
    return patches, h_out, w_out


@functools.partial(jax.jit,
                   static_argnames=("filter_size", "stride", "padding", "tile_m"))
def conv_bn_layer(x_nchw, conv_w, bn_gamma, bn_beta, *,
                  filter_size, stride, padding, tile_m=512):
    """ConvBNLayer.forward.  x_nchw: (N, Cin, H, W); conv_w: (Cout, Cin, K, K)."""
    n = x_nchw.shape[0]
    c_out, c_in, k, _ = conv_w.shape
    assert k == filter_size

    # --- im2col in bf16, fused into this jit (bf16 halves patch HBM traffic) ---------
    x_bf = x_nchw.astype(jnp.bfloat16)
    patches, h_out, w_out = _im2col(x_bf, k, stride, padding)     # (M, KD) bf16
    m, kd = patches.shape

    # --- lane-dense / MXU-friendly padding -------------------------------------------
    co_pad = _round_up(c_out, 128)
    kd_pad = _round_up(kd, 128)
    tm = _round_up(min(tile_m, m), 8)
    m_pad = _round_up(m, tm)
    tn = 256 if co_pad % 256 == 0 else 128
    grid_m = m_pad // tm
    grid_n = co_pad // tn

    patches_p = jnp.pad(patches, ((0, m_pad - m), (0, kd_pad - kd)))
    w2d = jnp.transpose(conv_w, (2, 3, 1, 0)).reshape(kd, c_out).astype(jnp.bfloat16)
    w_p = jnp.pad(w2d, ((0, kd_pad - kd), (0, co_pad - c_out)))

    # --- explicit VMEM budget for the chosen tiles ------------------------------------
    tile_bytes = (tm * kd_pad * 2     # patch tile (bf16)
                  + kd_pad * tn * 2   # weight tile (bf16)
                  + tm * tn * 4       # y tile (f32)
                  + 8 * tn * 4        # stats tile (f32)
                  + tm * tn * 4       # pass-2 output tile
                  + 2 * tn * 4)       # scale/shift
    vmem_limit = int(min(max(4 * tile_bytes, 16 * 1024 * 1024), 64 * 1024 * 1024))

    # --- pass 1: conv matmul + per-tile BN partial sums -------------------------------
    y, stats = pl.pallas_call(
        _conv_stats_kernel,
        grid=(grid_m, grid_n),
        in_specs=[
            pl.BlockSpec((tm, kd_pad), lambda mi, ni: (mi, 0)),
            pl.BlockSpec((kd_pad, tn), lambda mi, ni: (0, ni)),
        ],
        out_specs=[
            pl.BlockSpec((tm, tn), lambda mi, ni: (mi, ni)),
            pl.BlockSpec((8, tn), lambda mi, ni: (mi, ni)),
        ],
        out_shape=[
            jax.ShapeDtypeStruct((m_pad, co_pad), jnp.float32),
            jax.ShapeDtypeStruct((grid_m * 8, co_pad), jnp.float32),
        ],
        compiler_params=pltpu.CompilerParams(
            dimension_semantics=("parallel", "parallel"),
            vmem_limit_bytes=vmem_limit),
    )(patches_p, w_p)

    # --- finalize BN stats (tiny reduction; padded rows contribute exact zeros) -------
    tot = stats.reshape(grid_m, 8, co_pad).sum(axis=0)            # (8, CO_pad)
    mean = tot[0] / m
    var = jnp.maximum(tot[1] / m - mean * mean, 0.0)              # biased (train-mode)
    inv = jax.lax.rsqrt(var + BN_EPS)
    gamma_p = jnp.pad(bn_gamma.astype(jnp.float32), (0, co_pad - c_out))
    beta_p = jnp.pad(bn_beta.astype(jnp.float32), (0, co_pad - c_out))
    scale = (gamma_p * inv).reshape(1, co_pad)
    shift = (beta_p - mean * gamma_p * inv).reshape(1, co_pad)

    # --- pass 2: normalize + affine + SiLU --------------------------------------------
    out_flat = pl.pallas_call(
        _bn_silu_kernel,
        grid=(grid_m, grid_n),
        in_specs=[
            pl.BlockSpec((tm, tn), lambda mi, ni: (mi, ni)),
            pl.BlockSpec((1, tn), lambda mi, ni: (0, ni)),
            pl.BlockSpec((1, tn), lambda mi, ni: (0, ni)),
        ],
        out_specs=pl.BlockSpec((tm, tn), lambda mi, ni: (mi, ni)),
        out_shape=jax.ShapeDtypeStruct((m_pad, co_pad), x_nchw.dtype),
        compiler_params=pltpu.CompilerParams(
            dimension_semantics=("parallel", "parallel"),
            vmem_limit_bytes=vmem_limit),
    )(y, scale, shift)

    out = out_flat[:m, :c_out].reshape(n, h_out, w_out, c_out)
    return jnp.transpose(out, (0, 3, 1, 2))                       # back to NCHW


def _init_params(key, ch_in, ch_out, filter_size):
    # xavier_uniform_ with gain = calculate_gain('relu') = sqrt(2)
    gain = jnp.sqrt(2.0)
    fan_in = ch_in * filter_size * filter_size
    fan_out = ch_out * filter_size * filter_size
    bound = gain * jnp.sqrt(6.0 / (fan_in + fan_out))
    conv_w = jax.random.uniform(
        key, (ch_out, ch_in, filter_size, filter_size),
        minval=-bound, maxval=bound, dtype=jnp.float32)
    bn_gamma = jnp.ones((ch_out,), jnp.float32)   # nn.init.constant_(weight, 1)
    bn_beta = jnp.zeros((ch_out,), jnp.float32)   # nn.init.constant_(bias, 0)
    return conv_w, bn_gamma, bn_beta


def _reference(x, conv_w, gamma, beta, stride, padding):
    # Reference with the same bf16 matmul operands / f32 accumulation as the kernel.
    y = jax.lax.conv_general_dilated(
        x.astype(jnp.bfloat16), conv_w.astype(jnp.bfloat16),
        window_strides=(stride, stride),
        padding=[(padding, padding), (padding, padding)],
        dimension_numbers=("NCHW", "OIHW", "NCHW"),
        preferred_element_type=jnp.float32)
    mean = jnp.mean(y, axis=(0, 2, 3), keepdims=True)
    var = jnp.mean((y - mean) ** 2, axis=(0, 2, 3), keepdims=True)
    z = (y - mean) * jax.lax.rsqrt(var + BN_EPS)
    z = z * gamma.reshape(1, -1, 1, 1) + beta.reshape(1, -1, 1, 1)
    return z * jax.nn.sigmoid(z)


if __name__ == "__main__":
    key = jax.random.PRNGKey(0)

    # (N, Cin, H, W, Cout, K, stride, pad, tile_m)
    configs = [
        (2, 4, 16, 16, 8, 3, 1, 1, 128),   # multiple row tiles, Cout/KD lane padding
        (2, 3, 15, 15, 6, 3, 2, 0, 64),    # stride 2, ragged M -> exercises M padding
    ]

    for (N, C_IN, H, W, C_OUT, K, STRIDE, PAD, TM) in configs:
        key, k_x, k_w = jax.random.split(key, 3)
        x = jax.random.normal(k_x, (N, C_IN, H, W), dtype=jnp.float32)
        conv_w, bn_gamma, bn_beta = _init_params(k_w, C_IN, C_OUT, K)

        out = conv_bn_layer(x, conv_w, bn_gamma, bn_beta,
                            filter_size=K, stride=STRIDE, padding=PAD, tile_m=TM)
        out = jax.block_until_ready(out)

        ref = jax.block_until_ready(
            _reference(x, conv_w, bn_gamma, bn_beta, STRIDE, PAD))

        assert out.shape == ref.shape, (out.shape, ref.shape)
        max_err = float(jnp.max(jnp.abs(out - ref)))
        assert jnp.allclose(out, ref, atol=2e-3, rtol=2e-3), (
            f"mismatch vs reference (max abs err {max_err:.2e})")

    print("KERNEL_OK")
</pallas_src>

<mosaic_0001>
module attributes {stable_mosaic.version = 11 : i64} {
  func.func @_conv_stats_kernel(%arg0: i32, %arg1: i32, %arg2: memref<128x128xbf16, #tpu.memory_space<vmem>>, %arg3: memref<128x128xbf16, #tpu.memory_space<vmem>>, %arg4: memref<128x128xf32, #tpu.memory_space<vmem>>, %arg5: memref<8x128xf32, #tpu.memory_space<vmem>>) attributes {dimension_semantics = [#tpu.dimension_semantics<parallel>, #tpu.dimension_semantics<parallel>], iteration_bounds = array<i64: 4, 1>, scalar_prefetch = 0 : i64, scratch_operands = 0 : i64, tpu.core_type = #tpu.core_type<tc>, window_params = [{transform_indices = @transform_0, window_bounds = array<i64: 128, 128>}, {transform_indices = @transform_1, window_bounds = array<i64: 128, 128>}, {transform_indices = @transform_2, window_bounds = array<i64: 128, 128>}, {transform_indices = @transform_3, window_bounds = array<i64: 8, 128>}]} {
    %c0 = arith.constant 0 : index
    %c0_0 = arith.constant 0 : index
    %0 = vector.load %arg2[%c0, %c0_0] : memref<128x128xbf16, #tpu.memory_space<vmem>>, vector<128x128xbf16>
    %c0_1 = arith.constant 0 : index
    %c0_2 = arith.constant 0 : index
    %1 = vector.load %arg3[%c0_1, %c0_2] : memref<128x128xbf16, #tpu.memory_space<vmem>>, vector<128x128xbf16>
    %cst = arith.constant dense<0.000000e+00> : vector<128x128xf32>
    %2 = tpu.matmul %0, %1, %cst {dimension_numbers = #tpu.dot_dimension_numbers<[1], [0], [0], [1], [0, 0, 1, 1], [], []>} : vector<128x128xbf16>, vector<128x128xbf16>, vector<128x128xf32> -> vector<128x128xf32>
    %c0_3 = arith.constant 0 : index
    %c0_4 = arith.constant 0 : index
    %3 = vector.load %arg4[%c0_3, %c0_4] : memref<128x128xf32, #tpu.memory_space<vmem>>, vector<128x128xf32>
    tpu.vector_store %arg4[%c0_3, %c0_4], %2 {strides = array<i32>} : memref<128x128xf32, #tpu.memory_space<vmem>>, vector<128x128xf32>,
    %cst_5 = arith.constant dense<0.000000e+00> : vector<128xf32>
    %4 = vector.multi_reduction <add>, %2, %cst_5 [0] : vector<128x128xf32> to vector<128xf32>
    %5 = vector.shape_cast %4 : vector<128xf32> to vector<1x128xf32>
    %6 = arith.mulf %2, %2 : vector<128x128xf32>
    %cst_6 = arith.constant dense<0.000000e+00> : vector<128xf32>
    %7 = vector.multi_reduction <add>, %6, %cst_6 [0] : vector<128x128xf32> to vector<128xf32>
    %8 = vector.shape_cast %7 : vector<128xf32> to vector<1x128xf32>
    %9 = tpu.iota {dimensions = array<i32: 0>} : vector<8x128xi32>
    %c0_i32 = arith.constant 0 : i32
    %10 = vector.broadcast %c0_i32 : i32 to vector<8x128xi32>
    %11 = arith.cmpi eq, %9, %10 : vector<8x128xi32>
    %c1_i32 = arith.constant 1 : i32
    %12 = vector.broadcast %c1_i32 : i32 to vector<8x128xi32>
    %13 = arith.cmpi eq, %9, %12 : vector<8x128xi32>
    %cst_7 = arith.constant 0.000000e+00 : f32
    %14 = vector.shape_cast %8 : vector<1x128xf32> to vector<1x128xf32>
    %15 = vector.broadcast %14 : vector<1x128xf32> to vector<8x128xf32>
    %16 = vector.broadcast %cst_7 : f32 to vector<8x128xf32>
    %17 = arith.select %13, %15, %16 : vector<8x128xi1>, vector<8x128xf32>
    %18 = vector.shape_cast %5 : vector<1x128xf32> to vector<1x128xf32>
    %19 = vector.broadcast %18 : vector<1x128xf32> to vector<8x128xf32>
    %20 = arith.select %11, %19, %17 : vector<8x128xi1>, vector<8x128xf32>
    %c0_8 = arith.constant 0 : index
    %c0_9 = arith.constant 0 : index
    %21 = vector.load %arg5[%c0_8, %c0_9] : memref<8x128xf32, #tpu.memory_space<vmem>>, vector<8x128xf32>
    tpu.vector_store %arg5[%c0_8, %c0_9], %20 {strides = array<i32>} : memref<8x128xf32, #tpu.memory_space<vmem>>, vector<8x128xf32>,
    return
  }
  func.func @transform_0(%arg0: i32, %arg1: i32) -> (i32, i32) {
    %c0_i32 = arith.constant 0 : i32
    %c0_i32_0 = arith.constant 0 : i32
    return %arg0, %c0_i32 : i32, i32
  }
  func.func @transform_1(%arg0: i32, %arg1: i32) -> (i32, i32) {
    %c0_i32 = arith.constant 0 : i32
    %c0_i32_0 = arith.constant 0 : i32
    return %c0_i32, %arg1 : i32, i32
  }
  func.func @transform_2(%arg0: i32, %arg1: i32) -> (i32, i32) {
    %c0_i32 = arith.constant 0 : i32
    return %arg0, %arg1 : i32, i32
  }
  func.func @transform_3(%arg0: i32, %arg1: i32) -> (i32, i32) {
    %c0_i32 = arith.constant 0 : i32
    return %arg0, %arg1 : i32, i32
  }
}

module attributes {stable_mosaic.version = 11 : i64} {
  func.func @_bn_silu_kernel(%arg0: i32, %arg1: i32, %arg2: memref<128x128xf32, #tpu.memory_space<vmem>>, %arg3: memref<1x128xf32, #tpu.memory_space<vmem>>, %arg4: memref<1x128xf32, #tpu.memory_space<vmem>>, %arg5: memref<128x128xf32, #tpu.memory_space<vmem>>) attributes {dimension_semantics = [#tpu.dimension_semantics<parallel>, #tpu.dimension_semantics<parallel>], iteration_bounds = array<i64: 4, 1>, scalar_prefetch = 0 : i64, scratch_operands = 0 : i64, tpu.core_type = #tpu.core_type<tc>, window_params = [{transform_indices = @transform_0, window_bounds = array<i64: 128, 128>}, {transform_indices = @transform_1, window_bounds = array<i64: 1, 128>}, {transform_indices = @transform_2, window_bounds = array<i64: 1, 128>}, {transform_indices = @transform_3, window_bounds = array<i64: 128, 128>}]} {
    %c0 = arith.constant 0 : index
    %c0_0 = arith.constant 0 : index
    %0 = vector.load %arg2[%c0, %c0_0] : memref<128x128xf32, #tpu.memory_space<vmem>>, vector<128x128xf32>
    %c0_1 = arith.constant 0 : index
    %c0_2 = arith.constant 0 : index
    %1 = vector.load %arg3[%c0_1, %c0_2] : memref<1x128xf32, #tpu.memory_space<vmem>>, vector<1x128xf32>
    %2 = vector.broadcast %1 : vector<1x128xf32> to vector<128x128xf32>
    %3 = arith.mulf %0, %2 : vector<128x128xf32>
    %c0_3 = arith.constant 0 : index
    %c0_4 = arith.constant 0 : index
    %4 = vector.load %arg4[%c0_3, %c0_4] : memref<1x128xf32, #tpu.memory_space<vmem>>, vector<1x128xf32>
    %5 = vector.broadcast %4 : vector<1x128xf32> to vector<128x128xf32>
    %6 = arith.addf %3, %5 : vector<128x128xf32>
    %7 = arith.negf %6 : vector<128x128xf32>
    %8 = math.exp %7 : vector<128x128xf32>
    %cst = arith.constant 1.000000e+00 : f32
    %9 = vector.broadcast %cst : f32 to vector<128x128xf32>
    %10 = arith.addf %9, %8 : vector<128x128xf32>
    %11 = arith.divf %9, %10 : vector<128x128xf32>
    %12 = arith.mulf %6, %11 : vector<128x128xf32>
    %c0_5 = arith.constant 0 : index
    %c0_6 = arith.constant 0 : index
    %13 = vector.load %arg5[%c0_5, %c0_6] : memref<128x128xf32, #tpu.memory_space<vmem>>, vector<128x128xf32>
    tpu.vector_store %arg5[%c0_5, %c0_6], %12 {strides = array<i32>} : memref<128x128xf32, #tpu.memory_space<vmem>>, vector<128x128xf32>,
    return
  }
  func.func @transform_0(%arg0: i32, %arg1: i32) -> (i32, i32) {
    %c0_i32 = arith.constant 0 : i32
    return %arg0, %arg1 : i32, i32
  }
  func.func @transform_1(%arg0: i32, %arg1: i32) -> (i32, i32) {
    %c0_i32 = arith.constant 0 : i32
    %c0_i32_0 = arith.constant 0 : i32
    return %c0_i32, %arg1 : i32, i32
  }
  func.func @transform_2(%arg0: i32, %arg1: i32) -> (i32, i32) {
    %c0_i32 = arith.constant 0 : i32
    %c0_i32_0 = arith.constant 0 : i32
    return %c0_i32, %arg1 : i32, i32
  }
  func.func @transform_3(%arg0: i32, %arg1: i32) -> (i32, i32) {
    %c0_i32 = arith.constant 0 : i32
    return %arg0, %arg1 : i32, i32
  }
}

</mosaic_0001>

<bundles_post_ra>
// kernel: conv_bn_layer.3
= control target key start
LH: loop header
LB: loop body
LE: loop exit
PB: predicated region body
PF: predicated region fallthrough
CT: control target
= control target key end

     0   :  { %s688_s12 = smov 0   ;;  %s690_s13 = smov 0   ;;  %s870_s0 = inlined_call_operand.vmem [shape: f32[512,128], index: 0, kind: input, shape index: {}]   ;;  %s871_s1 = inlined_call_operand.vmem [shape: f32[1,128], index: 1, kind: input, shape index: {}]   ;;  %s872_s2 = inlined_call_operand.vmem [shape: f32[1,128], index: 2, kind: input, shape index: {}]   ;;  %s873_s3 = inlined_call_operand.vmem [shape: f32[512,128], index: 3, kind: output, shape index: {}]  }
   0x1   :  { %s692_s14 = smov 0  }
   0x2 LB: > { %s25_s15 = sadd.s32 1, %s662_s13  ;;  %p531_p0 = scmp.ge.s32.totalorder %s666_s14, 1  ;;  %s666_s14 = sphi %s692_s14, %s13_s14   ;;  %s662_s13 = sphi %s690_s13, %s875_s13   ;;  %s658_s12 = sphi %s688_s12, %s874_s12  }
   0x3   : > { %p27_p1 = scmp.ge.s32.totalorder %s25_s15, 4  ;;  %p173_p2 = scmp.lt.s32.totalorder %s666_s14, 5 }
   0x5   : > { %s877_s15 = smov (%p27_p1, %s25_s15), 0  ;;  %p174_p3 = pnand %p531_p0, %p173_p2 }
   0x6   : > { %s532_s16 = sshll.u32 (!%p174_p3), %s658_s12, 4  ;;  %v712_v0 = vld [vmem:[%s871_s1] ss:$0 sm:$0xff] (!%p174_p3) }
   0x7   : > { %177 = sbr.rel (%p174_p3) target bundleno = 79 (0x4f), region = 32  ;;  %p210_p4 = scmp.lt.s32.totalorder (!%p174_p3), %s532_s16, 63  ;;  %v724_v1 = vld [vmem:[%s872_s2] ss:$0 sm:$0xff] (!%p174_p3) }
   0xe   : > { %s879_s16 = smov (!%p210_p4, %s532_s16), 63 }
   0xf   : > { %s533_s17 = sshll.u32 %s879_s16, 3 }
  0x10   : > { %s719_s22 = scalar_lea.vmem %s870_s0, %s533_s17  ;;  %s825_s27 = scalar_lea.vmem %s873_s3, %s533_s17 }
  0x11   : > { %v233_v2 = vld [vmem:[%s719_s22] sm:$0xff]  ;;  %v234_v3 = vld [vmem:[%s719_s22 + $0x8] sm:$0xff]  ;;  %v235_v4 = vld [vmem:[%s719_s22 + $0x10] sm:$0xff] }
  0x12   : > { %v256_v5 = vmul.f32 %v712_v0, %v233_v2  ;;  %v257_v6 = vmul.f32 %v712_v0, %v234_v3  ;;  %v258_v7 = vmul.f32 %v712_v0, %v235_v4  ;;  %v236_v8 = vld [vmem:[%s719_s22 + $0x18] sm:$0xff]  ;;  %v237_v9 = vld [vmem:[%s719_s22 + $0x20] sm:$0xff]  ;;  %v238_v10 = vld [vmem:[%s719_s22 + $0x28] sm:$0xff] }
  0x13   : > { %v259_v11 = vmul.f32 %v712_v0, %v236_v8  ;;  %v260_v12 = vmul.f32 %v712_v0, %v237_v9  ;;  %v261_v13 = vmul.f32 %v712_v0, %v238_v10  ;;  %v239_v14 = vld [vmem:[%s719_s22 + $0x30] sm:$0xff]  ;;  %v240_v15 = vld [vmem:[%s719_s22 + $0x38] sm:$0xff]  ;;  %v241_v20 = vld [vmem:[%s719_s22 + $0x40] sm:$0xff] }
  0x14   : > { %v741_v16 = vadd.f32 %v724_v1, %v256_v5  ;;  %v744_v17 = vadd.f32 %v724_v1, %v257_v6  ;;  %v747_v18 = vadd.f32 %v724_v1, %v258_v7  ;;  %v262_v19 = vmul.f32 %v712_v0, %v239_v14  ;;  %v242_v25 = vld [vmem:[%s719_s22 + $0x48] sm:$0xff]  ;;  %v243_v26 = vld [vmem:[%s719_s22 + $0x50] sm:$0xff]  ;;  %v244_v27 = vld [vmem:[%s719_s22 + $0x58] sm:$0xff] }
  0x15   : > { %v752_v21 = vadd.f32 %v724_v1, %v259_v11  ;;  %v755_v22 = vadd.f32 %v724_v1, %v260_v12  ;;  %v758_v23 = vadd.f32 %v724_v1, %v261_v13  ;;  %v263_v24 = vmul.f32 %v712_v0, %v240_v15  ;;  %v245_v35 = vld [vmem:[%s719_s22 + $0x60] sm:$0xff]  ;;  %v246_v57 = vld [vmem:[%s719_s22 + $0x68] sm:$0xff]  ;;  %v247_v60 = vld [vmem:[%s719_s22 + $0x70] sm:$0xff] }
  0x16   : > { %v538_v28 = vmul.f32 -1.442695, %v741_v16  ;;  %v539_v29 = vmul.f32 -1.442695, %v744_v17  ;;  %v540_v30 = vmul.f32 -1.442695, %v747_v18  ;;  %v768_v31 = vadd.f32 %v724_v1, %v262_v19 }
  0x17   : > { %v541_v32 = vmul.f32 -1.442695, %v752_v21  ;;  %v542_v33 = vmul.f32 -1.442695, %v755_v22  ;;  %v773_v34 = vadd.f32 %v724_v1, %v263_v24  ;;  %v543_v36 = vmul.f32 -1.442695, %v758_v23 }
  0x18   : > { %580 = vpow2.f32 %v538_v28  ;;  %v264_v37 = vmul.f32 %v712_v0, %v241_v20  ;;  %v265_v38 = vmul.f32 %v712_v0, %v242_v25  ;;  %v544_v39 = vmul.f32 -1.442695, %v768_v31  ;;  %v248_v63 = vld [vmem:[%s719_s22 + $0x78] sm:$0xff] }
  0x19   : > { %582 = vpow2.f32 %v539_v29  ;;  %v266_v40 = vmul.f32 %v712_v0, %v243_v26  ;;  %v267_v41 = vmul.f32 %v712_v0, %v244_v27  ;;  %v268_v44 = vmul.f32 %v712_v0, %v245_v35 }
  0x1a   : > { %584 = vpow2.f32 %v540_v30  ;;  %v783_v42 = vadd.f32 %v724_v1, %v264_v37  ;;  %v786_v43 = vadd.f32 %v724_v1, %v265_v38  ;;  %v545_v45 = vmul.f32 -1.442695, %v773_v34 }
  0x1b   : > { %586 = vpow2.f32 %v541_v32  ;;  %v791_v46 = vadd.f32 %v724_v1, %v266_v40  ;;  %v794_v47 = vadd.f32 %v724_v1, %v267_v41  ;;  %v798_v49 = vadd.f32 %v724_v1, %v268_v44 }
  0x1c   : > { %588 = vpow2.f32 %v542_v33  ;;  %v546_v48 = vmul.f32 -1.442695, %v783_v42  ;;  %v547_v50 = vmul.f32 -1.442695, %v786_v43  ;;  %v269_v4 = vmul.f32 %v712_v0, %v246_v57 }
  0x1d   : > { %590 = vpow2.f32 %v543_v36  ;;  %v548_v51 = vmul.f32 -1.442695, %v791_v46  ;;  %v549_v52 = vmul.f32 -1.442695, %v794_v47  ;;  %v550_v53 = vmul.f32 -1.442695, %v798_v49 }
  0x1e   : > { %592 = vpow2.f32 %v544_v39  ;;  %v270_v7 = vmul.f32 %v712_v0, %v247_v60  ;;  %v271_v10 = vmul.f32 %v712_v0, %v248_v63  ;;  %v811_v15 = vadd.f32 %v724_v1, %v269_v4 }
  0x1f   : > { %594 = vpow2.f32 %v545_v45 }
  0x20   : > { %596 = vpow2.f32 %v546_v48  ;;  %v814_v24 = vadd.f32 %v724_v1, %v270_v7  ;;  %v817_v0 = vadd.f32 %v724_v1, %v271_v10  ;;  %v551_v32 = vmul.f32 -1.442695, %v811_v15 }
  0x21   : > { %598 = vpow2.f32 %v547_v50 }
  0x22   : > { %v581_v54 = vpop.eup %580  ;;  %600 = vpow2.f32 %v548_v51  ;;  %v552_v35 = vmul.f32 -1.442695, %v814_v24  ;;  %v553_v38 = vmul.f32 -1.442695, %v817_v0 }
  0x23   : > { %v583_v55 = vpop.eup %582  ;;  %v343_v56 = vadd.f32 1.0, %v581_v54  ;;  %602 = vpow2.f32 %v549_v52 }
  0x24   : > { %v585_v58 = vpop.eup %584  ;;  %v344_v59 = vadd.f32 1.0, %v583_v55  ;;  %604 = vpow2.f32 %v550_v53 }
  0x25   : > { %v587_v61 = vpop.eup %586  ;;  %606 = vrcp.f32 %v343_v56  ;;  %v345_v62 = vadd.f32 1.0, %v585_v58 }
  0x26   : > { %v589_v2 = vpop.eup %588  ;;  %608 = vrcp.f32 %v344_v59  ;;  %v346_v3 = vadd.f32 1.0, %v587_v61 }
  0x27   : > { %v591_v5 = vpop.eup %590  ;;  %610 = vrcp.f32 %v345_v62  ;;  %v347_v6 = vadd.f32 1.0, %v589_v2 }
  0x28   : > { %v593_v8 = vpop.eup %592  ;;  %612 = vrcp.f32 %v346_v3  ;;  %v348_v9 = vadd.f32 1.0, %v591_v5 }
  0x29   : > { %v595_v11 = vpop.eup %594  ;;  %614 = vrcp.f32 %v347_v6  ;;  %v349_v12 = vadd.f32 1.0, %v593_v8 }
  0x2a   : > { %v597_v13 = vpop.eup %596  ;;  %616 = vrcp.f32 %v348_v9  ;;  %v350_v14 = vadd.f32 1.0, %v595_v11 }
  0x2b   : > { %v599_v19 = vpop.eup %598  ;;  %618 = vrcp.f32 %v349_v12  ;;  %v351_v20 = vadd.f32 1.0, %v597_v13 }
  0x2c   : > { %v601_v25 = vpop.eup %600  ;;  %620 = vrcp.f32 %v350_v14  ;;  %v352_v26 = vadd.f32 1.0, %v599_v19 }
  0x2d   : > { %v603_v27 = vpop.eup %602  ;;  %622 = vrcp.f32 %v351_v20  ;;  %v353_v28 = vadd.f32 1.0, %v601_v25 }
  0x2e   : > { %v605_v29 = vpop.eup %604  ;;  %624 = vrcp.f32 %v352_v26  ;;  %v354_v30 = vadd.f32 1.0, %v603_v27 }
  0x2f   : > { %v607_v33 = vpop.eup %606  ;;  %626 = vrcp.f32 %v353_v28  ;;  %v355_v1 = vadd.f32 1.0, %v605_v29 }
  0x30   : > { %v609_v36 = vpop.eup %608  ;;  %v391_v37 = vmul.f32 %v607_v33, %v741_v16  ;;  %628 = vrcp.f32 %v354_v30 }
  0x31   : > { %v611_v39 = vpop.eup %610  ;;  %v392_v40 = vmul.f32 %v609_v36, %v744_v17  ;;  %630 = vrcp.f32 %v355_v1 }
  0x32   : > { %v613_v41 = vpop.eup %612  ;;  %407 = vst [vmem:[%s825_s27] sm:$0xff] %v391_v37  ;;  %v393_v44 = vmul.f32 %v611_v39, %v747_v18  ;;  %632 = vpow2.f32 %v551_v32 }
  0x33   : > { %v615_v45 = vpop.eup %614  ;;  %408 = vst [vmem:[%s825_s27 + $0x8] sm:$0xff] %v392_v40  ;;  %v394_v48 = vmul.f32 %v613_v41, %v752_v21  ;;  %634 = vpow2.f32 %v552_v35 }
  0x34   : > { %v617_v16 = vpop.eup %616  ;;  %409 = vst [vmem:[%s825_s27 + $0x10] sm:$0xff] %v393_v44  ;;  %v395_v50 = vmul.f32 %v615_v45, %v755_v22  ;;  %636 = vpow2.f32 %v553_v38 }
  0x35   : > { %v619_v17 = vpop.eup %618  ;;  %410 = vst [vmem:[%s825_s27 + $0x18] sm:$0xff] %v394_v48  ;;  %v396_v51 = vmul.f32 %v617_v16, %v758_v23 }
  0x36   : > { %v621_v18 = vpop.eup %620  ;;  %411 = vst [vmem:[%s825_s27 + $0x20] sm:$0xff] %v395_v50  ;;  %v397_v52 = vmul.f32 %v619_v17, %v768_v31 }
  0x37   : > { %v623_v53 = vpop.eup %622  ;;  %412 = vst [vmem:[%s825_s27 + $0x28] sm:$0xff] %v396_v51  ;;  %v398_v21 = vmul.f32 %v621_v18, %v773_v34 }
  0x38   : > { %v625_v54 = vpop.eup %624  ;;  %413 = vst [vmem:[%s825_s27 + $0x30] sm:$0xff] %v397_v52  ;;  %v399_v22 = vmul.f32 %v623_v53, %v783_v42 }
  0x39   : > { %v627_v55 = vpop.eup %626  ;;  %414 = vst [vmem:[%s825_s27 + $0x38] sm:$0xff] %v398_v21  ;;  %v400_v23 = vmul.f32 %v625_v54, %v786_v43 }
  0x3a   : > { %v629_v56 = vpop.eup %628  ;;  %415 = vst [vmem:[%s825_s27 + $0x40] sm:$0xff] %v399_v22  ;;  %v401_v57 = vmul.f32 %v627_v55, %v791_v46 }
  0x3b   : > { %v631_v31 = vpop.eup %630  ;;  %416 = vst [vmem:[%s825_s27 + $0x48] sm:$0xff] %v400_v23  ;;  %v402_v58 = vmul.f32 %v629_v56, %v794_v47 }
  0x3c   : > { %v633_v59 = vpop.eup %632  ;;  %417 = vst [vmem:[%s825_s27 + $0x50] sm:$0xff] %v401_v57  ;;  %v403_v34 = vmul.f32 %v631_v31, %v798_v49 }
  0x3d   : > { %v635_v60 = vpop.eup %634  ;;  %418 = vst [vmem:[%s825_s27 + $0x58] sm:$0xff] %v402_v58  ;;  %v356_v42 = vadd.f32 1.0, %v633_v59 }
  0x3e   : > { %v637_v61 = vpop.eup %636  ;;  %419 = vst [vmem:[%s825_s27 + $0x60] sm:$0xff] %v403_v34  ;;  %v357_v43 = vadd.f32 1.0, %v635_v60 }
  0x3f   : > { %638 = vrcp.f32 %v356_v42  ;;  %v358_v62 = vadd.f32 1.0, %v637_v61 }
  0x40   : > { %640 = vrcp.f32 %v357_v43 }
  0x41   : > { %642 = vrcp.f32 %v358_v62 }
  0x49   : > { %v639_v46 = vpop.eup %638 }
  0x4a   : > { %v641_v63 = vpop.eup %640  ;;  %v404_v47 = vmul.f32 %v639_v46, %v811_v15 }
  0x4b   : > { %v643_v2 = vpop.eup %642  ;;  %v405_v49 = vmul.f32 %v641_v63, %v814_v24 }
  0x4c   : > { %420 = vst [vmem:[%s825_s27 + $0x68] sm:$0xff] %v404_v47  ;;  %v406_v3 = vmul.f32 %v643_v2, %v817_v0 }
  0x4d   : > { %421 = vst [vmem:[%s825_s27 + $0x70] sm:$0xff] %v405_v49 }
  0x4e   : > { %422 = vst [vmem:[%s825_s27 + $0x78] sm:$0xff] %v406_v3 }
  0x4f PF: > { %s13_s14 = sadd.s32 1, %s666_s14   ;;  %s874_s12 = smov %s662_s13 }
  0x50   : > { %p10_p5 = scmp.ge.s32.totalorder %s13_s14, 6   ;;  %s875_s13 = smov %s877_s15 }
  0x52   :  { %12 = sbr.rel (!%p10_p5) target bundleno = 2 (0x2), region = 68 }

// kernel: conv_bn_layer.2
= control target key start
LH: loop header
LB: loop body
LE: loop exit
PB: predicated region body
PF: predicated region fallthrough
CT: control target
= control target key end

     0   :  { %s845_s12 = smov 0   ;;  %s847_s13 = smov 0   ;;  %s942_s0 = inlined_call_operand.vmem [shape: bf16[512,128], index: 0, kind: input, shape index: {}]   ;;  %s943_s1 = inlined_call_operand.vmem [shape: bf16[128,128], index: 1, kind: input, shape index: {}]   ;;  %s944_s2 = inlined_call_operand.vmem [shape: f32[512,128], index: 2, kind: output, shape index: {0}]   ;;  %s945_s3 = inlined_call_operand.vmem [shape: f32[32,128], index: 3, kind: output, shape index: {1}]  }
   0x1   :  { %s849_s14 = smov 0  }
   0x2 LB: > { %s26_s15 = sadd.s32 1, %s819_s13  ;;  %p673_p0 = scmp.ge.s32.totalorder %s823_s14, 1  ;;  %s823_s14 = sphi %s849_s14, %s14_s14   ;;  %s819_s13 = sphi %s847_s13, %s947_s13   ;;  %s815_s12 = sphi %s845_s12, %s946_s12  }
   0x3   : > { %p28_p1 = scmp.ge.s32.totalorder %s26_s15, 4  ;;  %p166_p2 = scmp.lt.s32.totalorder %s823_s14, 5 }
   0x5   : > { %s949_s15 = smov (%p28_p1, %s26_s15), 0  ;;  %p167_p3 = pnand %p673_p0, %p166_p2 }
   0x6   : > { %v785_v0 = vld [vmem:[%s943_s1] sm:$0xff] (!%p167_p3)   ;;  %s674_s18 = sshll.u32 (!%p167_p3), %s815_s12, 4  ;;  %v786_v1 = vld [vmem:[%s943_s1 + $0x8] sm:$0xff] (!%p167_p3)   ;;  %v787_v2 = vld [vmem:[%s943_s1 + $0x10] sm:$0xff] (!%p167_p3)   ;;  %p223_p5 = scmp.lt.s32.totalorder (!%p167_p3), %s815_s12, 3 }
   0x7   : > { %170 = sbr.rel (%p167_p3) target bundleno = 301 (0x12d), region = 28  ;;  %p205_p4 = scmp.lt.s32.totalorder (!%p167_p3), %s674_s18, 63  ;;  %713 = vmatprep.subr.bf16.mxu0 (!%p167_p3), %v785_v0  ;;  %745 = vmatprep.subr.bf16.mxu1 (!%p167_p3), %v785_v0  ;;  %v788_v3 = vld [vmem:[%s943_s1 + $0x18] sm:$0xff] (!%p167_p3)   ;;  %v789_v5 = vld [vmem:[%s943_s1 + $0x20] sm:$0xff] (!%p167_p3)   ;;  %v790_v7 = vld [vmem:[%s943_s1 + $0x28] sm:$0xff] (!%p167_p3)  }
   0x8   : > { %714 = vmatpush3.bf16.msra.mxu0 (!%p167_p3), %v785_v0  ;;  %753 = vmatpush3.bf16.msra.mxu1 (!%p167_p3), %v785_v0  ;;  %v791_v8 = vld [vmem:[%s943_s1 + $0x30] sm:$0xff] (!%p167_p3)   ;;  %v792_v9 = vld [vmem:[%s943_s1 + $0x38] sm:$0xff] (!%p167_p3)  }
   0x9   : > { %715 = vmatprep.subr.bf16.mxu0 (!%p167_p3), %v786_v1  ;;  %746 = vmatprep.subr.bf16.mxu1 (!%p167_p3), %v786_v1 }
   0xc   : > { %716 = vmatpush3.bf16.msra.mxu0 (!%p167_p3), %v786_v1  ;;  %754 = vmatpush3.bf16.msra.mxu1 (!%p167_p3), %v786_v1 }
   0xd   : > { %717 = vmatprep.subr.bf16.mxu0 (!%p167_p3), %v787_v2  ;;  %747 = vmatprep.subr.bf16.mxu1 (!%p167_p3), %v787_v2 }
   0xe   : > { %s951_s18 = smov (!%p205_p4, %s674_s18), 63  ;;  %s953_s12 = smov (!%p223_p5, %s815_s12), 3 }
   0xf   : > { %s675_s23 = sshll.u32 %s951_s18, 2  ;;  %s677_s10 = sshll.u32 %s951_s18, 3 }
  0x10   : > { %s881_s26 = scalar_lea.vmem %s942_s0, %s675_s23  ;;  %718 = vmatpush3.bf16.msra.mxu0 %v787_v2  ;;  %755 = vmatpush3.bf16.msra.mxu1 %v787_v2  ;;  %s910_s17 = scalar_lea.vmem %s944_s2, %s677_s10 }
  0x11   : > { %v793_v4 = vld [vmem:[%s881_s26] sm:$0xff]   ;;  %719 = vmatprep.subr.bf16.mxu0 %v788_v3  ;;  %748 = vmatprep.subr.bf16.mxu1 %v788_v3  ;;  %v794_v10 = vld [vmem:[%s881_s26 + $0x8] sm:$0xff]   ;;  %v795_v12 = vld [vmem:[%s881_s26 + $0x10] sm:$0xff]   ;;  %s678_s18 = sshll.u32 %s953_s12, 3 }
  0x12   : > { %729 = vmatprep.mubr.bf16.mxu0 %v793_v4  ;;  %v797_v6 = vld [vmem:[%s881_s26 + $0x20] sm:$0xff]   ;;  %v798_v11 = vld [vmem:[%s881_s26 + $0x28] sm:$0xff]   ;;  %v799_v13 = vld [vmem:[%s881_s26 + $0x30] sm:$0xff]   ;;  %s229_s21 = scalar_lea.vmem %s945_s3, %s678_s18 }
  0x13   : > { %737 = vmatprep.mubr.bf16.mxu1 %v797_v6  ;;  %v796_v14 = vld [vmem:[%s881_s26 + $0x18] sm:$0xff]  }
  0x14   : > { %720 = vmatpush3.bf16.msra.mxu0 %v788_v3  ;;  %756 = vmatpush3.bf16.msra.mxu1 %v788_v3  ;;  %v800_v15 = vld [vmem:[%s881_s26 + $0x38] sm:$0xff]  }
  0x15   : > { %721 = vmatprep.subr.bf16.mxu0 %v789_v5  ;;  %749 = vmatprep.subr.bf16.mxu1 %v789_v5 }
  0x18   : > { %722 = vmatpush3.bf16.msra.mxu0 %v789_v5  ;;  %757 = vmatpush3.bf16.msra.mxu1 %v789_v5 }
  0x19   : > { %723 = vmatprep.subr.bf16.mxu0 %v790_v7  ;;  %750 = vmatprep.subr.bf16.mxu1 %v790_v7 }
  0x1c   : > { %724 = vmatpush3.bf16.msra.mxu0 %v790_v7  ;;  %758 = vmatpush3.bf16.msra.mxu1 %v790_v7 }
  0x1d   : > { %725 = vmatprep.subr.bf16.mxu0 %v791_v8  ;;  %751 = vmatprep.subr.bf16.mxu1 %v791_v8 }
  0x20   : > { %726 = vmatpush3.bf16.msra.mxu0 %v791_v8  ;;  %759 = vmatpush3.bf16.msra.mxu1 %v791_v8 }
  0x21   : > { %727 = vmatprep.subr.bf16.mxu0 %v792_v9  ;;  %752 = vmatprep.subr.bf16.mxu1 %v792_v9 }
  0x24   : > { %728 = vmatpush3.bf16.msra.mxu0 %v792_v9  ;;  %760 = vmatpush3.bf16.msra.mxu1 %v792_v9 }
  0x27   : > { %730 = vmatmul.mubr.bf16.vlgmr.msra.gmra.mrb[0].mxu0 %v794_v10  ;;  %738 = vmatmul.mubr.bf16.vlgmr.msra.gmra.mrb[0].mxu1 %v798_v11 }
  0x28   : > { %733 = vmatprep.mubr.bf16.mxu0 %v795_v12  ;;  %741 = vmatprep.mubr.bf16.mxu1 %v799_v13 }
  0x2f   : > { %734 = vmatmul.mubr.bf16.gmra.mrb[4].mxu0 %v796_v14  ;;  %742 = vmatmul.mubr.bf16.gmra.mrb[4].mxu1 %v800_v15 }
  0xfa   : > { %v731_v16 = vpop.f32.mrb[0].mxu0  ;;  %v739_v17 = vpop.f32.mrb[0].mxu1 }
  0xfb   : > { %458 = vst [vmem:[%s910_s17 + $0x10] sm:$0xff] %v731_v16  ;;  %v393_v18 = vpop.f32.mrb[1].mxu0  ;;  %466 = vst [vmem:[%s910_s17 + $0x50] sm:$0xff] %v739_v17  ;;  %v425_v19 = vpop.f32.mrb[1].mxu1  ;;  %v495_v27 = vmul.f32 %v731_v16, %v731_v16  ;;  %v503_v59 = vmul.f32 %v739_v17, %v739_v17 }
  0xfc   : > { %456 = vst [vmem:[%s910_s17] sm:$0xff] %v393_v18  ;;  %v732_v20 = vpop.f32.mrb[2].mxu0  ;;  %464 = vst [vmem:[%s910_s17 + $0x40] sm:$0xff] %v425_v19  ;;  %v740_v21 = vpop.f32.mrb[2].mxu1  ;;  %v493_v24 = vmul.f32 %v393_v18, %v393_v18  ;;  %v501_v53 = vmul.f32 %v425_v19, %v425_v19 }
  0xfd   : > { %459 = vst [vmem:[%s910_s17 + $0x18] sm:$0xff] %v732_v20  ;;  %v396_v22 = vpop.f32.mrb[3].mxu0  ;;  %467 = vst [vmem:[%s910_s17 + $0x58] sm:$0xff] %v740_v21  ;;  %v428_v23 = vpop.f32.mrb[3].mxu1  ;;  %v496_v30 = vmul.f32 %v732_v20, %v732_v20  ;;  %v504_v62 = vmul.f32 %v740_v21, %v740_v21 }
  0xfe   : > { %457 = vst [vmem:[%s910_s17 + $0x8] sm:$0xff] %v396_v22  ;;  %v472_v25 = vadd.f32 %v396_v22, %v393_v18  ;;  %v494_v26 = vmul.f32 %v396_v22, %v396_v22  ;;  %465 = vst [vmem:[%s910_s17 + $0x48] sm:$0xff] %v428_v23  ;;  %v502_v58 = vmul.f32 %v428_v23, %v428_v23 }
 0x100   : > { %v473_v28 = vadd.f32 %v731_v16, %v472_v25  ;;  %v509_v29 = vadd.f32 %v494_v26, %v493_v24 }
 0x102   : > { %v510_v31 = vadd.f32 %v509_v29, %v495_v27  ;;  %v735_v32 = vpop.f32.mrb[4].mxu0  ;;  %v474_v33 = vadd.f32 %v732_v20, %v473_v28  ;;  %v743_v34 = vpop.f32.mrb[4].mxu1 }
 0x103   : > { %462 = vst [vmem:[%s910_s17 + $0x30] sm:$0xff] %v735_v32  ;;  %v409_v35 = vpop.f32.mrb[5].mxu0  ;;  %470 = vst [vmem:[%s910_s17 + $0x70] sm:$0xff] %v743_v34  ;;  %v441_v36 = vpop.f32.mrb[5].mxu1  ;;  %v499_v47 = vmul.f32 %v735_v32, %v735_v32  ;;  %v507_v7 = vmul.f32 %v743_v34, %v743_v34 }
 0x104   : > { %460 = vst [vmem:[%s910_s17 + $0x20] sm:$0xff] %v409_v35  ;;  %v475_v37 = vadd.f32 %v474_v33, %v409_v35  ;;  %v497_v38 = vmul.f32 %v409_v35, %v409_v35  ;;  %v511_v39 = vadd.f32 %v510_v31, %v496_v30  ;;  %v736_v40 = vpop.f32.mrb[6].mxu0  ;;  %468 = vst [vmem:[%s910_s17 + $0x60] sm:$0xff] %v441_v36  ;;  %v744_v41 = vpop.f32.mrb[6].mxu1 }
 0x105   : > { %463 = vst [vmem:[%s910_s17 + $0x38] sm:$0xff] %v736_v40  ;;  %v412_v42 = vpop.f32.mrb[7].mxu0  ;;  %471 = vst [vmem:[%s910_s17 + $0x78] sm:$0xff] %v744_v41  ;;  %v444_v43 = vpop.f32.mrb[7].mxu1  ;;  %v500_v50 = vmul.f32 %v736_v40, %v736_v40  ;;  %v505_v1 = vmul.f32 %v441_v36, %v441_v36  ;;  %v508_v10 = vmul.f32 %v744_v41, %v744_v41 }
 0x106   : > { %v512_v44 = vadd.f32 %v511_v39, %v497_v38  ;;  %461 = vst [vmem:[%s910_s17 + $0x28] sm:$0xff] %v412_v42  ;;  %v476_v45 = vadd.f32 %v475_v37, %v412_v42  ;;  %v498_v46 = vmul.f32 %v412_v42, %v412_v42  ;;  %469 = vst [vmem:[%s910_s17 + $0x68] sm:$0xff] %v444_v43 }
 0x107   : > { %v506_v6 = vmul.f32 %v444_v43, %v444_v43 }
 0x108   : > { %v477_v48 = vadd.f32 %v735_v32, %v476_v45  ;;  %v513_v49 = vadd.f32 %v512_v44, %v498_v46 }
 0x10a   : > { %v514_v51 = vadd.f32 %v513_v49, %v499_v47  ;;  %v478_v52 = vadd.f32 %v736_v40, %v477_v48 }
 0x10c   : > { %v479_v54 = vadd.f32 %v478_v52, %v425_v19  ;;  %v515_v55 = vadd.f32 %v514_v51, %v500_v50 }
 0x10e   : > { %v516_v56 = vadd.f32 %v515_v55, %v501_v53  ;;  %v480_v57 = vadd.f32 %v479_v54, %v428_v23 }
 0x110   : > { %v481_v60 = vadd.f32 %v739_v17, %v480_v57  ;;  %v517_v61 = vadd.f32 %v516_v56, %v502_v58  ;;  %v530_v17 = vlaneseq }
 0x112   : > { %v518_v63 = vadd.f32 %v517_v61, %v503_v59  ;;  %v482_v0 = vadd.f32 %v740_v21, %v481_v60  ;;  %v531_v22 = vshrl.u32 %v530_v17, 7 }
 0x114   : > { %v483_v2 = vadd.f32 %v482_v0, %v441_v36  ;;  %v519_v3 = vadd.f32 %v518_v63, %v504_v62  ;;  %vm533_vm0 = vcmp.eq.s32.totalorder %v531_v22, 1  ;;  %vm532_vm1 = vcmp.eq.s32.totalorder %v531_v22, 0 }
 0x116   : > { %v520_v4 = vadd.f32 %v519_v3, %v505_v1  ;;  %v484_v5 = vadd.f32 %v483_v2, %v444_v43 }
 0x118   : > { %v485_v8 = vadd.f32 %v743_v34, %v484_v5  ;;  %v521_v9 = vadd.f32 %v520_v4, %v506_v6 }
 0x11a   : > { %v486_v11 = vadd.f32 %v744_v41, %v485_v8  ;;  %v522_v12 = vadd.f32 %v521_v9, %v507_v7 }
 0x11c   : > { %v487_v13 = vrot.slane %v486_v11, 4  ;;  %v523_v14 = vadd.f32 %v522_v12, %v508_v10 }
 0x11e   : > { %v488_v15 = vadd.f32 %v487_v13, %v486_v11  ;;  %v524_v16 = vrot.slane %v523_v14, 4 }
 0x120   : > { %v489_v18 = vrot.slane %v488_v15, 2  ;;  %v525_v19 = vadd.f32 %v524_v16, %v523_v14 }
 0x122   : > { %v490_v20 = vadd.f32 %v489_v18, %v488_v15  ;;  %v526_v21 = vrot.slane %v525_v19, 2 }
 0x124   : > { %v527_v23 = vadd.f32 %v526_v21, %v525_v19  ;;  %v491_v24 = vrot.slane %v490_v20, 1 }
 0x126   : > { %v528_v25 = vrot.slane %v527_v23, 1  ;;  %v492_v27 = vadd.f32 %v491_v24, %v490_v20 }
 0x128   : > { %v529_v26 = vadd.f32 %v528_v25, %v527_v23 }
 0x12a   : > { %v534_v28 = vsel %vm533_vm0, %v529_v26, 0.0 }
 0x12b   : > { %v535_v29 = vsel %vm532_vm1, %v492_v27, %v534_v28 }
 0x12c   : > { %536 = vst [vmem:[%s229_s21] sm:$0xff] %v535_v29 }
 0x12d PF: > { %s14_s14 = sadd.s32 1, %s823_s14   ;;  %s946_s12 = smov %s819_s13 }
 0x12e   : > { %p11_p6 = scmp.ge.s32.totalorder %s14_s14, 6   ;;  %s947_s13 = smov %s949_s15 }
 0x130   :  { %13 = sbr.rel (!%p11_p6) target bundleno = 2 (0x2), region = 73 }

</bundles_post_ra>
